<compile_context>
chip_gen: v6e
topology: v6e:2x2x1
jax: 0.10.0
libtpu: 0.0.40
codegen_flags: <defaults>
</compile_context>

<pallas_src>
import functools

import jax
import jax.numpy as jnp
from jax.experimental import pallas as pl
from jax.experimental.pallas import tpu as pltpu


def _round_up(x, m):
    return ((x + m - 1) // m) * m


def _tserkd_kernel(oh_ref, tea_ref, stu_ref, out_ref,
                   pt_ref, ct_ref, acc_ce_ref, acc_kl_ref, acc_ent_ref,
                   *, t_total, tile_t, nt_inner):
    c = pl.program_id(0)          # 2-way split of the T loop (parallel axis)
    t = pl.program_id(1)          # sequential T-block index within the split

    # ---- once per core segment: teacher softmax cache + accumulator init ----
    @pl.when(t == 0)
    def _():
        tea = tea_ref[...].astype(jnp.float32)
        t_max = jnp.max(tea, axis=-1, keepdims=True)
        t_shift = tea - t_max
        e_t = jnp.exp(t_shift)                                   # single exp
        z_t = jnp.sum(e_t, axis=-1, keepdims=True)
        inv_z_t = pl.reciprocal(z_t)                             # exact
        log_z_t = jnp.log(z_t)
        p_t = e_t * inv_z_t                                      # (B, K) softmax
        pt_ref[...] = p_t
        # c_t[b] = sum_k p_t * log p_t (negative teacher entropy, per sample)
        ct_ref[...] = jnp.sum(p_t * t_shift, axis=-1, keepdims=True) - log_z_t
        acc_ce_ref[...] = jnp.zeros_like(acc_ce_ref)
        acc_kl_ref[...] = jnp.zeros_like(acc_kl_ref)
        acc_ent_ref[...] = jnp.zeros_like(acc_ent_ref)

    # ---- student slab: TILE_T time-steps processed in one pass ---------------
    s = stu_ref[...].astype(jnp.float32)            # (TT, B, K)
    TT, B, _ = s.shape

    s_max = jnp.max(s, axis=-1, keepdims=True)      # (TT, B, 1)
    s_shift = s - s_max
    e = jnp.exp(s_shift)                            # the only exp over (TT,B,K)
    z = jnp.sum(e, axis=-1, keepdims=True)
    log_z = jnp.log(z)
    inv_z = pl.reciprocal(z)                        # exact (1e-5 tolerance)

    oh = oh_ref[...][None]                          # (1, B, K) one-hot targets
    p_t = pt_ref[...][None]                         # (1, B, K) cached teacher
    ct = ct_ref[...][None]                          # (1, B, 1)

    # gather-free CE numerator + the two distillation dots (no second exp, no
    # broadcast division over K):
    ce_gather = jnp.sum(oh * s_shift, axis=-1, keepdims=True)    # (TT,B,1)
    kl_dot = jnp.sum(p_t * s_shift, axis=-1, keepdims=True)      # (TT,B,1)
    ent_dot = jnp.sum(e * s_shift, axis=-1, keepdims=True)       # (TT,B,1)

    # tail / duplicated-block mask.  Using where() (a select) means any NaN/Inf
    # garbage from rows beyond T can never reach the accumulators.
    t_start = (c * nt_inner + t) * tile_t
    row = jax.lax.broadcasted_iota(jnp.int32, (TT, B, 1), 0)
    valid = (t_start + row) < t_total

    #   -log p_s[target]  = log Z - s_shift[target]
    #   KL(p_t || p_s)    = c_t + log Z - sum_k p_t * s_shift
    #   H(p_s)            = log Z - (1/Z) * sum_k e * s_shift
    ce_rows = jnp.where(valid, log_z - ce_gather, 0.0)
    kl_rows = jnp.where(valid, ct + log_z - kl_dot, 0.0)
    ent_rows = jnp.where(valid, log_z - inv_z * ent_dot, 0.0)

    acc_ce_ref[...] += jnp.sum(ce_rows, axis=0)      # (B, 1)
    acc_kl_ref[...] += jnp.sum(kl_rows, axis=0)
    acc_ent_ref[...] += jnp.sum(ent_rows, axis=0)

    # ---- epilogue (last inner step only): lane-dense packing ----------------
    @pl.when(t == pl.num_programs(1) - 1)
    def _():
        ce_tot = jnp.sum(acc_ce_ref[...], axis=0, keepdims=True)   # (1, 1)
        kl_tot = jnp.sum(acc_kl_ref[...], axis=0, keepdims=True)
        ent_tot = jnp.sum(acc_ent_ref[...], axis=0, keepdims=True)
        lane = jax.lax.broadcasted_iota(jnp.int32, (1, 8, 128), 2)
        out_ref[...] = (jnp.where(lane == 0, ce_tot, 0.0)
                        + jnp.where(lane == 1, kl_tot, 0.0)
                        + jnp.where(lane == 2, ent_tot, 0.0))


def tserkd_loss(tea_logits, stu_spk_out, targets, *, alpha, gamma, tau=1.0,
                tile_t=None):
    """JAX/Pallas equivalent of TSERKDLoss.forward.

    Note: in the PyTorch module the sub-losses (TSCELoss / TSKLLoss / EntropyReg)
    are constructed with their DEFAULT tau = 1.0 — the outer `tau` is never
    forwarded.  We replicate that behaviour exactly.
    """
    T, B, K = stu_spk_out.shape
    del tau                                    # discarded, matching the module

    # ---- per-generation VMEM budget (v7x: 64 MiB, v5e/v6e: 128 MiB) ----------
    try:
        vmem_cap = int(pltpu.get_tpu_info().vmem_capacity_bytes)
    except Exception:
        vmem_cap = 64 * 1024 * 1024
    vmem_limit = min(96 * 1024 * 1024, max(32 * 1024 * 1024, vmem_cap // 2))

    if tile_t is None:
        # Footprint ~ 2x double-buffered input slab + ~6 live f32 temporaries,
        # all at lane/sublane-PADDED sizes (K pads to 128 lanes, B to 8 sublanes).
        per_t_bytes = _round_up(B, 8) * _round_up(K, 128) * 4
        budget = int(vmem_limit * 0.75)
        tile_t = max(1, min(T, budget // (8 * per_t_bytes)))
    tile_t = int(tile_t)

    nt_total = pl.cdiv(T, tile_t)        # cdiv + in-kernel tail mask (any T works)
    nt_inner = pl.cdiv(nt_total, 2)      # per-core block count for the 2-way split

    one_hot = jax.nn.one_hot(targets.astype(jnp.int32), K, dtype=jnp.float32)

    kernel = functools.partial(_tserkd_kernel, t_total=T, tile_t=tile_t,
                               nt_inner=nt_inner)

    def stu_map(c, t):
        # Clamp so the (at most one) overhang block re-reads the last valid block;
        # its rows are fully masked inside the kernel.
        return (jnp.minimum(c * nt_inner + t, nt_total - 1), 0, 0)

    sums = pl.pallas_call(
        kernel,
        out_shape=jax.ShapeDtypeStruct((2, 8, 128), jnp.float32),
        grid_spec=pltpu.PrefetchScalarGridSpec(
            num_scalar_prefetch=0,
            grid=(2, nt_inner),
            in_specs=[
                pl.BlockSpec((B, K), lambda c, t: (0, 0)),         # one-hot (resident)
                pl.BlockSpec((B, K), lambda c, t: (0, 0)),         # teacher (resident)
                pl.BlockSpec((tile_t, B, K), stu_map),             # student slab
            ],
            out_specs=pl.BlockSpec((1, 8, 128), lambda c, t: (c, 0, 0)),
            scratch_shapes=[
                pltpu.VMEM((B, K), jnp.float32),   # cached teacher softmax p_t
                pltpu.VMEM((B, 1), jnp.float32),   # cached sum_k p_t * log p_t
                pltpu.VMEM((B, 1), jnp.float32),   # CE accumulator
                pltpu.VMEM((B, 1), jnp.float32),   # KL accumulator
                pltpu.VMEM((B, 1), jnp.float32),   # entropy accumulator
            ],
        ),
        compiler_params=pltpu.CompilerParams(
            dimension_semantics=("parallel", "arbitrary"),
            vmem_limit_bytes=vmem_limit,
        ),
    )(one_hot, tea_logits, stu_spk_out)

    totals = sums[0, 0] + sums[1, 0]                 # (128,), lanes 0/1/2 = CE/KL/H
    inv_denom = 1.0 / float(T * B)
    ce = totals[0] * inv_denom
    kl = totals[1] * inv_denom                       # sub-loss tau == 1 → tau**2 == 1
    ent = totals[2] * inv_denom
    total = (1.0 - alpha) * ce + alpha * kl - gamma * ent
    return total, ce, kl, ent


def _reference(tea_logits, stu_spk_out, targets, *, alpha, gamma):
    """Pure-JAX reference mirroring the PyTorch forward (sub-loss tau = 1)."""
    T, B, K = stu_spk_out.shape
    log_p_s = jax.nn.log_softmax(stu_spk_out, axis=-1)          # (T,B,K)
    p_s = jnp.exp(log_p_s)
    log_p_t = jax.nn.log_softmax(tea_logits, axis=-1)           # (B,K)
    p_t = jnp.exp(log_p_t)

    flat = log_p_s.reshape(T * B, K)
    rep_tgt = jnp.tile(targets.astype(jnp.int32), T)
    ce = -jnp.mean(jnp.take_along_axis(flat, rep_tgt[:, None], axis=1))

    kl = jnp.mean(jnp.sum(p_t[None] * (log_p_t[None] - log_p_s), axis=-1))
    ent = jnp.mean(-jnp.sum(p_s * log_p_s, axis=-1))
    total = (1.0 - alpha) * ce + alpha * kl - gamma * ent
    return total, ce, kl, ent


if __name__ == "__main__":
    alpha, gamma = 0.7, 0.1
    key = jax.random.PRNGKey(0)

    # Case 1: canonical small shapes, auto tile (single T block, both cores).
    T, B, K = 4, 8, 32
    k1, k2, k3 = jax.random.split(key, 3)
    stu_spk_out = jax.random.normal(k1, (T, B, K), dtype=jnp.float32)
    tea_logits = jax.random.normal(k2, (B, K), dtype=jnp.float32)
    targets = jax.random.randint(k3, (B,), 0, K, dtype=jnp.int32)

    out = jax.block_until_ready(
        tserkd_loss(tea_logits, stu_spk_out, targets, alpha=alpha, gamma=gamma))
    ref = _reference(tea_logits, stu_spk_out, targets, alpha=alpha, gamma=gamma)
    for got, want in zip(out, ref):
        assert jnp.allclose(got, want, atol=1e-5, rtol=1e-5), (got, want)

    # Case 2: awkward T with a forced small tile — exercises cdiv + tail mask and
    # the clamped/duplicated block on the second half of the T split.
    T2 = 5
    k4, k5, k6 = jax.random.split(k1, 3)
    stu2 = jax.random.normal(k4, (T2, B, K), dtype=jnp.float32)
    tea2 = jax.random.normal(k5, (B, K), dtype=jnp.float32)
    tgt2 = jax.random.randint(k6, (B,), 0, K, dtype=jnp.int32)

    out2 = jax.block_until_ready(
        tserkd_loss(tea2, stu2, tgt2, alpha=alpha, gamma=gamma, tile_t=2))
    ref2 = _reference(tea2, stu2, tgt2, alpha=alpha, gamma=gamma)
    for got, want in zip(out2, ref2):
        assert jnp.allclose(got, want, atol=1e-5, rtol=1e-5), (got, want)

    print("KERNEL_OK")
</pallas_src>

<mosaic_0001>
module attributes {stable_mosaic.version = 11 : i64} {
  func.func @_tserkd_kernel(%arg0: i32, %arg1: i32, %arg2: memref<8x32xf32, #tpu.memory_space<vmem>>, %arg3: memref<8x32xf32, #tpu.memory_space<vmem>>, %arg4: memref<4x8x32xf32, #tpu.memory_space<vmem>>, %arg5: memref<1x8x128xf32, #tpu.memory_space<vmem>>, %arg6: memref<8x32xf32, #tpu.memory_space<vmem>>, %arg7: memref<8x1xf32, #tpu.memory_space<vmem>>, %arg8: memref<8x1xf32, #tpu.memory_space<vmem>>, %arg9: memref<8x1xf32, #tpu.memory_space<vmem>>, %arg10: memref<8x1xf32, #tpu.memory_space<vmem>>) attributes {dimension_semantics = [#tpu.dimension_semantics<parallel>, #tpu.dimension_semantics<arbitrary>], iteration_bounds = array<i64: 2, 1>, scalar_prefetch = 0 : i64, scratch_operands = 5 : i64, tpu.core_type = #tpu.core_type<tc>, window_params = [{pipeline_mode = #tpu.pipeline_mode<synchronous>, transform_indices = @transform_0, window_bounds = array<i64: 8, 32>}, {pipeline_mode = #tpu.pipeline_mode<synchronous>, transform_indices = @transform_1, window_bounds = array<i64: 8, 32>}, {transform_indices = @transform_2, window_bounds = array<i64: 4, 8, 32>}, {transform_indices = @transform_3, window_bounds = array<i64: 1, 8, 128>}]} {
    %c0_i32 = arith.constant 0 : i32
    %0 = arith.cmpi eq, %arg1, %c0_i32 : i32
    %1 = arith.extui %0 : i1 to i32
    %c0_i32_0 = arith.constant 0 : i32
    %2 = arith.cmpi ne, %1, %c0_i32_0 : i32
    scf.if %2 {
      %c0_34 = arith.constant 0 : index
      %c0_35 = arith.constant 0 : index
      %65 = vector.load %arg3[%c0_34, %c0_35] : memref<8x32xf32, #tpu.memory_space<vmem>>, vector<8x32xf32>
      %cst_36 = arith.constant dense<0xFF800000> : vector<8xf32>
      %66 = vector.multi_reduction <maximumf>, %65, %cst_36 [1] : vector<8x32xf32> to vector<8xf32>
      %67 = vector.shape_cast %66 : vector<8xf32> to vector<8x1xf32>
      %68 = vector.broadcast %67 : vector<8x1xf32> to vector<8x32xf32>
      %69 = arith.subf %65, %68 : vector<8x32xf32>
      %70 = math.exp %69 : vector<8x32xf32>
      %cst_37 = arith.constant dense<0.000000e+00> : vector<8xf32>
      %71 = vector.multi_reduction <add>, %70, %cst_37 [1] : vector<8x32xf32> to vector<8xf32>
      %72 = vector.shape_cast %71 : vector<8xf32> to vector<8x1xf32>
      %73 = tpu.reciprocal %72 : vector<8x1xf32> -> vector<8x1xf32>
      %74 = math.log %72 : vector<8x1xf32>
      %75 = vector.broadcast %73 : vector<8x1xf32> to vector<8x32xf32>
      %76 = arith.mulf %70, %75 : vector<8x32xf32>
      %c0_38 = arith.constant 0 : index
      %c0_39 = arith.constant 0 : index
      %77 = vector.load %arg6[%c0_38, %c0_39] : memref<8x32xf32, #tpu.memory_space<vmem>>, vector<8x32xf32>
      tpu.vector_store %arg6[%c0_38, %c0_39], %76 {strides = array<i32>} : memref<8x32xf32, #tpu.memory_space<vmem>>, vector<8x32xf32>,
      %78 = arith.mulf %76, %69 : vector<8x32xf32>
      %cst_40 = arith.constant dense<0.000000e+00> : vector<8xf32>
      %79 = vector.multi_reduction <add>, %78, %cst_40 [1] : vector<8x32xf32> to vector<8xf32>
      %80 = vector.shape_cast %79 : vector<8xf32> to vector<8x1xf32>
      %81 = arith.subf %80, %74 : vector<8x1xf32>
      %c0_41 = arith.constant 0 : index
      %c0_42 = arith.constant 0 : index
      %82 = vector.load %arg7[%c0_41, %c0_42] : memref<8x1xf32, #tpu.memory_space<vmem>>, vector<8x1xf32>
      tpu.vector_store %arg7[%c0_41, %c0_42], %81 {strides = array<i32>} : memref<8x1xf32, #tpu.memory_space<vmem>>, vector<8x1xf32>,
      %cst_43 = arith.constant 0.000000e+00 : f32
      %83 = vector.broadcast %cst_43 : f32 to vector<8x1xf32>
      %c0_44 = arith.constant 0 : index
      %c0_45 = arith.constant 0 : index
      %84 = vector.load %arg8[%c0_44, %c0_45] : memref<8x1xf32, #tpu.memory_space<vmem>>, vector<8x1xf32>
      tpu.vector_store %arg8[%c0_44, %c0_45], %83 {strides = array<i32>} : memref<8x1xf32, #tpu.memory_space<vmem>>, vector<8x1xf32>,
      %cst_46 = arith.constant 0.000000e+00 : f32
      %85 = vector.broadcast %cst_46 : f32 to vector<8x1xf32>
      %c0_47 = arith.constant 0 : index
      %c0_48 = arith.constant 0 : index
      %86 = vector.load %arg9[%c0_47, %c0_48] : memref<8x1xf32, #tpu.memory_space<vmem>>, vector<8x1xf32>
      tpu.vector_store %arg9[%c0_47, %c0_48], %85 {strides = array<i32>} : memref<8x1xf32, #tpu.memory_space<vmem>>, vector<8x1xf32>,
      %cst_49 = arith.constant 0.000000e+00 : f32
      %87 = vector.broadcast %cst_49 : f32 to vector<8x1xf32>
      %c0_50 = arith.constant 0 : index
      %c0_51 = arith.constant 0 : index
      %88 = vector.load %arg10[%c0_50, %c0_51] : memref<8x1xf32, #tpu.memory_space<vmem>>, vector<8x1xf32>
      tpu.vector_store %arg10[%c0_50, %c0_51], %87 {strides = array<i32>} : memref<8x1xf32, #tpu.memory_space<vmem>>, vector<8x1xf32>,
    } else {
    }
    %c0 = arith.constant 0 : index
    %c0_1 = arith.constant 0 : index
    %c0_2 = arith.constant 0 : index
    %3 = vector.load %arg4[%c0, %c0_1, %c0_2] : memref<4x8x32xf32, #tpu.memory_space<vmem>>, vector<4x8x32xf32>
    %cst = arith.constant dense<0xFF800000> : vector<4x8xf32>
    %4 = vector.multi_reduction <maximumf>, %3, %cst [2] : vector<4x8x32xf32> to vector<4x8xf32>
    %5 = vector.shape_cast %4 : vector<4x8xf32> to vector<4x8x1xf32>
    %6 = vector.broadcast %5 : vector<4x8x1xf32> to vector<4x8x32xf32>
    %7 = arith.subf %3, %6 : vector<4x8x32xf32>
    %8 = math.exp %7 : vector<4x8x32xf32>
    %cst_3 = arith.constant dense<0.000000e+00> : vector<4x8xf32>
    %9 = vector.multi_reduction <add>, %8, %cst_3 [2] : vector<4x8x32xf32> to vector<4x8xf32>
    %10 = vector.shape_cast %9 : vector<4x8xf32> to vector<4x8x1xf32>
    %11 = math.log %10 : vector<4x8x1xf32>
    %12 = tpu.reciprocal %10 : vector<4x8x1xf32> -> vector<4x8x1xf32>
    %c0_4 = arith.constant 0 : index
    %c0_5 = arith.constant 0 : index
    %13 = vector.load %arg2[%c0_4, %c0_5] : memref<8x32xf32, #tpu.memory_space<vmem>>, vector<8x32xf32>
    %14 = vector.shape_cast %13 : vector<8x32xf32> to vector<1x8x32xf32>
    %c0_6 = arith.constant 0 : index
    %c0_7 = arith.constant 0 : index
    %15 = vector.load %arg6[%c0_6, %c0_7] : memref<8x32xf32, #tpu.memory_space<vmem>>, vector<8x32xf32>
    %16 = vector.shape_cast %15 : vector<8x32xf32> to vector<1x8x32xf32>
    %c0_8 = arith.constant 0 : index
    %c0_9 = arith.constant 0 : index
    %17 = vector.load %arg7[%c0_8, %c0_9] : memref<8x1xf32, #tpu.memory_space<vmem>>, vector<8x1xf32>
    %18 = vector.shape_cast %17 : vector<8x1xf32> to vector<1x8x1xf32>
    %19 = vector.broadcast %14 : vector<1x8x32xf32> to vector<4x8x32xf32>
    %20 = arith.mulf %19, %7 : vector<4x8x32xf32>
    %cst_10 = arith.constant dense<0.000000e+00> : vector<4x8xf32>
    %21 = vector.multi_reduction <add>, %20, %cst_10 [2] : vector<4x8x32xf32> to vector<4x8xf32>
    %22 = vector.shape_cast %21 : vector<4x8xf32> to vector<4x8x1xf32>
    %23 = vector.broadcast %16 : vector<1x8x32xf32> to vector<4x8x32xf32>
    %24 = arith.mulf %23, %7 : vector<4x8x32xf32>
    %cst_11 = arith.constant dense<0.000000e+00> : vector<4x8xf32>
    %25 = vector.multi_reduction <add>, %24, %cst_11 [2] : vector<4x8x32xf32> to vector<4x8xf32>
    %26 = vector.shape_cast %25 : vector<4x8xf32> to vector<4x8x1xf32>
    %27 = arith.mulf %8, %7 : vector<4x8x32xf32>
    %cst_12 = arith.constant dense<0.000000e+00> : vector<4x8xf32>
    %28 = vector.multi_reduction <add>, %27, %cst_12 [2] : vector<4x8x32xf32> to vector<4x8xf32>
    %29 = vector.shape_cast %28 : vector<4x8xf32> to vector<4x8x1xf32>
    %c1_i32 = arith.constant 1 : i32
    %30 = arith.muli %arg0, %c1_i32 : i32
    %31 = arith.addi %30, %arg1 : i32
    %c4_i32 = arith.constant 4 : i32
    %32 = arith.muli %31, %c4_i32 : i32
    %33 = tpu.iota {dimensions = array<i32: 0>} : vector<4x8x1xi32>
    %34 = vector.broadcast %32 : i32 to vector<4x8x1xi32>
    %35 = arith.addi %34, %33 : vector<4x8x1xi32>
    %c4_i32_13 = arith.constant 4 : i32
    %36 = vector.broadcast %c4_i32_13 : i32 to vector<4x8x1xi32>
    %37 = arith.cmpi slt, %35, %36 : vector<4x8x1xi32>
    %38 = arith.subf %11, %22 : vector<4x8x1xf32>
    %cst_14 = arith.constant 0.000000e+00 : f32
    %39 = vector.broadcast %cst_14 : f32 to vector<4x8x1xf32>
    %40 = arith.select %37, %38, %39 : vector<4x8x1xi1>, vector<4x8x1xf32>
    %41 = vector.broadcast %18 : vector<1x8x1xf32> to vector<4x8x1xf32>
    %42 = arith.addf %41, %11 : vector<4x8x1xf32>
    %43 = arith.subf %42, %26 : vector<4x8x1xf32>
    %cst_15 = arith.constant 0.000000e+00 : f32
    %44 = vector.broadcast %cst_15 : f32 to vector<4x8x1xf32>
    %45 = arith.select %37, %43, %44 : vector<4x8x1xi1>, vector<4x8x1xf32>
    %46 = arith.mulf %12, %29 : vector<4x8x1xf32>
    %47 = arith.subf %11, %46 : vector<4x8x1xf32>
    %cst_16 = arith.constant 0.000000e+00 : f32
    %48 = vector.broadcast %cst_16 : f32 to vector<4x8x1xf32>
    %49 = arith.select %37, %47, %48 : vector<4x8x1xi1>, vector<4x8x1xf32>
    %c0_17 = arith.constant 0 : index
    %c0_18 = arith.constant 0 : index
    %50 = vector.load %arg8[%c0_17, %c0_18] : memref<8x1xf32, #tpu.memory_space<vmem>>, vector<8x1xf32>
    %cst_19 = arith.constant dense<0.000000e+00> : vector<8x1xf32>
    %51 = vector.multi_reduction <add>, %40, %cst_19 [0] : vector<4x8x1xf32> to vector<8x1xf32>
    %52 = arith.addf %50, %51 : vector<8x1xf32>
    %c0_20 = arith.constant 0 : index
    %c0_21 = arith.constant 0 : index
    %53 = vector.load %arg8[%c0_20, %c0_21] : memref<8x1xf32, #tpu.memory_space<vmem>>, vector<8x1xf32>
    tpu.vector_store %arg8[%c0_20, %c0_21], %52 {strides = array<i32>} : memref<8x1xf32, #tpu.memory_space<vmem>>, vector<8x1xf32>,
    %c0_22 = arith.constant 0 : index
    %c0_23 = arith.constant 0 : index
    %54 = vector.load %arg9[%c0_22, %c0_23] : memref<8x1xf32, #tpu.memory_space<vmem>>, vector<8x1xf32>
    %cst_24 = arith.constant dense<0.000000e+00> : vector<8x1xf32>
    %55 = vector.multi_reduction <add>, %45, %cst_24 [0] : vector<4x8x1xf32> to vector<8x1xf32>
    %56 = arith.addf %54, %55 : vector<8x1xf32>
    %c0_25 = arith.constant 0 : index
    %c0_26 = arith.constant 0 : index
    %57 = vector.load %arg9[%c0_25, %c0_26] : memref<8x1xf32, #tpu.memory_space<vmem>>, vector<8x1xf32>
    tpu.vector_store %arg9[%c0_25, %c0_26], %56 {strides = array<i32>} : memref<8x1xf32, #tpu.memory_space<vmem>>, vector<8x1xf32>,
    %c0_27 = arith.constant 0 : index
    %c0_28 = arith.constant 0 : index
    %58 = vector.load %arg10[%c0_27, %c0_28] : memref<8x1xf32, #tpu.memory_space<vmem>>, vector<8x1xf32>
    %cst_29 = arith.constant dense<0.000000e+00> : vector<8x1xf32>
    %59 = vector.multi_reduction <add>, %49, %cst_29 [0] : vector<4x8x1xf32> to vector<8x1xf32>
    %60 = arith.addf %58, %59 : vector<8x1xf32>
    %c0_30 = arith.constant 0 : index
    %c0_31 = arith.constant 0 : index
    %61 = vector.load %arg10[%c0_30, %c0_31] : memref<8x1xf32, #tpu.memory_space<vmem>>, vector<8x1xf32>
    tpu.vector_store %arg10[%c0_30, %c0_31], %60 {strides = array<i32>} : memref<8x1xf32, #tpu.memory_space<vmem>>, vector<8x1xf32>,
    %c0_i32_32 = arith.constant 0 : i32
    %62 = arith.cmpi eq, %arg1, %c0_i32_32 : i32
    %63 = arith.extui %62 : i1 to i32
    %c0_i32_33 = arith.constant 0 : i32
    %64 = arith.cmpi ne, %63, %c0_i32_33 : i32
    scf.if %64 {
      %c0_34 = arith.constant 0 : index
      %c0_35 = arith.constant 0 : index
      %65 = vector.load %arg8[%c0_34, %c0_35] : memref<8x1xf32, #tpu.memory_space<vmem>>, vector<8x1xf32>
      %cst_36 = arith.constant dense<0.000000e+00> : vector<1xf32>
      %66 = vector.multi_reduction <add>, %65, %cst_36 [0] : vector<8x1xf32> to vector<1xf32>
      %67 = vector.shape_cast %66 : vector<1xf32> to vector<1x1xf32>
      %c0_37 = arith.constant 0 : index
      %c0_38 = arith.constant 0 : index
      %68 = vector.load %arg9[%c0_37, %c0_38] : memref<8x1xf32, #tpu.memory_space<vmem>>, vector<8x1xf32>
      %cst_39 = arith.constant dense<0.000000e+00> : vector<1xf32>
      %69 = vector.multi_reduction <add>, %68, %cst_39 [0] : vector<8x1xf32> to vector<1xf32>
      %70 = vector.shape_cast %69 : vector<1xf32> to vector<1x1xf32>
      %c0_40 = arith.constant 0 : index
      %c0_41 = arith.constant 0 : index
      %71 = vector.load %arg10[%c0_40, %c0_41] : memref<8x1xf32, #tpu.memory_space<vmem>>, vector<8x1xf32>
      %cst_42 = arith.constant dense<0.000000e+00> : vector<1xf32>
      %72 = vector.multi_reduction <add>, %71, %cst_42 [0] : vector<8x1xf32> to vector<1xf32>
      %73 = vector.shape_cast %72 : vector<1xf32> to vector<1x1xf32>
      %74 = tpu.iota {dimensions = array<i32: 2>} : vector<1x8x128xi32>
      %c0_i32_43 = arith.constant 0 : i32
      %75 = vector.broadcast %c0_i32_43 : i32 to vector<1x8x128xi32>
      %76 = arith.cmpi eq, %74, %75 : vector<1x8x128xi32>
      %cst_44 = arith.constant 0.000000e+00 : f32
      %77 = vector.shape_cast %67 : vector<1x1xf32> to vector<1x1x1xf32>
      %78 = vector.broadcast %77 : vector<1x1x1xf32> to vector<1x8x128xf32>
      %79 = vector.broadcast %cst_44 : f32 to vector<1x8x128xf32>
      %80 = arith.select %76, %78, %79 : vector<1x8x128xi1>, vector<1x8x128xf32>
      %c1_i32_45 = arith.constant 1 : i32
      %81 = vector.broadcast %c1_i32_45 : i32 to vector<1x8x128xi32>
      %82 = arith.cmpi eq, %74, %81 : vector<1x8x128xi32>
      %cst_46 = arith.constant 0.000000e+00 : f32
      %83 = vector.shape_cast %70 : vector<1x1xf32> to vector<1x1x1xf32>
      %84 = vector.broadcast %83 : vector<1x1x1xf32> to vector<1x8x128xf32>
      %85 = vector.broadcast %cst_46 : f32 to vector<1x8x128xf32>
      %86 = arith.select %82, %84, %85 : vector<1x8x128xi1>, vector<1x8x128xf32>
      %87 = arith.addf %80, %86 : vector<1x8x128xf32>
      %c2_i32 = arith.constant 2 : i32
      %88 = vector.broadcast %c2_i32 : i32 to vector<1x8x128xi32>
      %89 = arith.cmpi eq, %74, %88 : vector<1x8x128xi32>
      %cst_47 = arith.constant 0.000000e+00 : f32
      %90 = vector.shape_cast %73 : vector<1x1xf32> to vector<1x1x1xf32>
      %91 = vector.broadcast %90 : vector<1x1x1xf32> to vector<1x8x128xf32>
      %92 = vector.broadcast %cst_47 : f32 to vector<1x8x128xf32>
      %93 = arith.select %89, %91, %92 : vector<1x8x128xi1>, vector<1x8x128xf32>
      %94 = arith.addf %87, %93 : vector<1x8x128xf32>
      %c0_48 = arith.constant 0 : index
      %c0_49 = arith.constant 0 : index
      %c0_50 = arith.constant 0 : index
      %95 = vector.load %arg5[%c0_48, %c0_49, %c0_50] : memref<1x8x128xf32, #tpu.memory_space<vmem>>, vector<1x8x128xf32>
      tpu.vector_store %arg5[%c0_48, %c0_49, %c0_50], %94 {strides = array<i32>} : memref<1x8x128xf32, #tpu.memory_space<vmem>>, vector<1x8x128xf32>,
    } else {
    }
    return
  }
  func.func @transform_0(%arg0: i32, %arg1: i32) -> (i32, i32) {
    %c0_i32 = arith.constant 0 : i32
    %c0_i32_0 = arith.constant 0 : i32
    %c0_i32_1 = arith.constant 0 : i32
    return %c0_i32, %c0_i32_0 : i32, i32
  }
  func.func @transform_1(%arg0: i32, %arg1: i32) -> (i32, i32) {
    %c0_i32 = arith.constant 0 : i32
    %c0_i32_0 = arith.constant 0 : i32
    %c0_i32_1 = arith.constant 0 : i32
    return %c0_i32, %c0_i32_0 : i32, i32
  }
  func.func @transform_2(%arg0: i32, %arg1: i32) -> (i32, i32, i32) {
    %c1_i32 = arith.constant 1 : i32
    %0 = arith.muli %arg0, %c1_i32 : i32
    %1 = arith.addi %0, %arg1 : i32
    %c0_i32 = arith.constant 0 : i32
    %2 = arith.minsi %1, %c0_i32 : i32
    %c0_i32_0 = arith.constant 0 : i32
    %c0_i32_1 = arith.constant 0 : i32
    %c0_i32_2 = arith.constant 0 : i32
    return %2, %c0_i32_0, %c0_i32_1 : i32, i32, i32
  }
  func.func @transform_3(%arg0: i32, %arg1: i32) -> (i32, i32, i32) {
    %c0_i32 = arith.constant 0 : i32
    %c0_i32_0 = arith.constant 0 : i32
    %c0_i32_1 = arith.constant 0 : i32
    return %arg0, %c0_i32, %c0_i32_0 : i32, i32, i32
  }
}

</mosaic_0001>

<bundles_post_ra>
// kernel: tpu_custom_call.1
= control target key start
LH: loop header
LB: loop body
LE: loop exit
PB: predicated region body
PF: predicated region fallthrough
CT: control target
= control target key end

     0   :  { %8 = vsyncpa [#allocation8], 0  ;;  %s1234_s0 = inlined_call_operand.hbm [shape: f32[8,32], index: 0, kind: input, shape index: {}]   ;;  %s1235_s1 = inlined_call_operand.hbm [shape: f32[8,32], index: 1, kind: input, shape index: {}]   ;;  %s1236_s2 = inlined_call_operand.hbm [shape: f32[4,8,32], index: 2, kind: input, shape index: {}]   ;;  %s1237_s3 = inlined_call_operand.hbm [shape: f32[2,8,128], index: 3, kind: output, shape index: {}]  }
   0x1   :  { %9 = vsyncpa [#allocation11], 0 }
   0x2   :  { %10 = vsyncpa [#allocation9], 0 }
   0x3   :  { %12 = vsyncpa [#allocation9 + $0x1], 0  ;;  %s982_s12 = smov 0   ;;  %s984_s13 = smov 0  }
   0x4   :  { %s986_s14 = smov 0   ;;  %s988_s15 = smov 0  }
   0x5   :  { %s990_s16 = smov 0   ;;  %s992_s17 = smov 0  }
   0x6   :  { %s994_s18 = smov 0   ;;  %s996_s19 = smov 0  }
   0x7 LB: > { %s1021_s20 = sadd.s32 4294967295, %s952_s19   ;;  %s601_s21 = sadd.s32 4294967294, %s952_s19   ;;  %s952_s19 = sphi %s996_s19, %s18_s19   ;;  %s948_s18 = sphi %s994_s18, %s1263_s18   ;;  %s944_s17 = sphi %s992_s17, %s1262_s17   ;;  %s940_s16 = sphi %s990_s16, %s1224_s16   ;;  %s936_s15 = sphi %s988_s15, %s1261_s15   ;;  %s932_s14 = sphi %s986_s14, %s1260_s14   ;;  %s928_s13 = sphi %s984_s13, %s1259_s13   ;;  %s924_s12 = sphi %s982_s12, %s1258_s12  }
   0x8   : > { %p921_p0 = scmp.ne.s32.totalorder %s940_s16, 0  ;;  %p93_p1 = scmp.eq.s32.totalorder %s952_s19, 0 }
   0x9   : > { %p98_p2 = scmp.ne.s32.totalorder %s940_s16, %s936_s15  ;;  %p1238_p3 = scmp.eq.s32.totalorder %s1021_s20, 0 }
   0xa   : > { %s111_s22 = sadd.s32 1, %s932_s14  ;;  %p1029_p4 = por %p921_p0, %p93_p1 }
   0xb   : > { %p121_p5 = scmp.ne.s32.totalorder %s932_s14, %s928_s13  ;;  %p1037_p6 = por %p1238_p3, %p98_p2 }
   0xc   : > { %p122_p7 = scmp.eq.s32.totalorder %s1021_s20, 1  ;;  %p127_p8 = scmp.ne.s32.totalorder %s928_s13, %s924_s12 }
   0xd   : > { %s1243_s24 = scalar_select %p1037_p6, 1, 0 }
   0xe   : > { %p128_p9 = scmp.eq.s32.totalorder %s601_s21, 1  ;;  %p1044_p10 = por %p122_p7, %p121_p5 }
   0xf   : > { %p602_p11 = scmp.ge.s32.totalorder %s952_s19, 1  ;;  %p135_p13 = scmp.lt.s32.totalorder %s952_s19, 3 }
  0x10   : > { %s1244_s25 = scalar_select %p1044_p10, 1, 0 }
  0x11   : > { %p1049_p12 = por %p128_p9, %p127_p8  ;;  %p1054_p0 = pnand %p602_p11, %p135_p13 }
  0x12   : > { %s954_s28 = smov [#allocation7]   ;;  %p649_p5 = scmp.lt.s32.totalorder %s952_s19, 2 }
  0x13   : > { %s1245_s26 = scalar_select %p1049_p12, 1, 0 }
  0x14   : > { %s1246_s27 = scalar_select %p1054_p0, 1, 0 }
  0x15   : > { %s148_s29 = sshll.u32 %s954_s28, 4  ;;  %p632_p2 = pneg %p1054_p0  ;;  %s149_s29 = int_to_ptr.vmem [resolvable:$true] %s148_s29 }
  0x16   : > { %p1070_p8 = pnand %p649_p5, %p1029_p4  ;;  %s955_s5 = smov [#allocation10]  }
  0x17   : > { %p1064_p7 = pnand %p632_p2, %p1238_p3  ;;  %s159_s6 = sshll.u32 %s955_s5, 4  ;;  %s160_s6 = int_to_ptr.vmem [resolvable:$true] %s159_s6 }
  0x18   : > { %s774_s7 = scalar_lea.vmem %s149_s29, 128  ;;  %p782_p1 = scmp.lt.s32.totalorder %s149_s29, %s149_s29 }
  0x19   : > { %p765_p9 = pneg %p1064_p7  ;;  %p775_p11 = scmp.ne.s32.totalorder %s149_s29, %s774_s7 }
  0x1a   : > { %p783_p3 = scmp.lt.s32.totalorder %s774_s7, %s774_s7 }
  0x1b   : > { %p777_p13 = pnand %p775_p11, %p765_p9 }
  0x1c   : > { %p784_p12 = por %p783_p3, %p782_p1 }
  0x1d   : > { %p778_p2 = pneg %p777_p13 }
  0x1f   : > { %p785_p10 = pnand %p784_p12, %p778_p2 }
  0x21   : > { %788 = shalt.err (!%p785_p10)
}
  0x22   : > { %635 = dma.hbm_to_vmem [thread:$0]  (!%p1064_p7), %s1234_s0, 128, %s149_s29, [#allocation8]  }
  0x23   : > { %s30_s10 = sadd.s32 1, %s948_s18  ;;  %s800_s11 = scalar_lea.vmem %s160_s6, 128 }
  0x24   : > { %p801_p4 = scmp.ne.s32.totalorder %s160_s6, %s800_s11  ;;  %p808_p13 = scmp.lt.s32.totalorder %s160_s6, %s160_s6 }
  0x25   : > { %p809_p3 = scmp.lt.s32.totalorder %s800_s11, %s800_s11 }
  0x26   : > { %p803_p5 = pnand %p801_p4, %p765_p9 }
  0x27   : > { %p810_p12 = por %p809_p3, %p808_p13 }
  0x28   : > { %p804_p11 = pneg %p803_p5 }
  0x2a   : > { %p811_p10 = pnand %p810_p12, %p804_p11 }
  0x2c   : > { %814 = shalt.err (!%p811_p10)
}
  0x2d   : > { %638 = dma.hbm_to_vmem [thread:$0]  (!%p1064_p7), %s1235_s1, 128, %s160_s6, [#allocation11]  }
  0x2e   : > { %p32_p1 = scmp.ge.s32.totalorder %s30_s10, 2  ;;  %s170_s23 = sand.u32 1, %s952_s19  }
  0x2f   : > { %s956_s30 = smov [#allocation12]   ;;  %s171_s7 = scalar_lea.sflag [#allocation8], %s170_s23 }
  0x30   : > { %s1265_s10 = smov (%p32_p1, %s30_s10), 0  ;;  %s184_s5 = sshll.u32 %s956_s30, 4  ;;  %s185_s5 = int_to_ptr.vmem [resolvable:$true] %s184_s5 }
  0x31   : > { %s108_s28 = ssub.s32 %s948_s18, %s1265_s10  ;;  %s815_s11 = scalar_lea.hbm %s1236_s2, 512 }
  0x32   : > { %p109_p9 = scmp.eq.s32.totalorder %s108_s28, 0  ;;  %p816_p7 = scmp.ne.s32.totalorder %s1236_s2, %s815_s11 }
  0x33   : > { %p817_p2 = pneg %p1070_p8  ;;  %p822_p11 = scmp.lt.s32.totalorder %s815_s11, %s815_s11 }
  0x34   : > { %s1101_s29 = scalar_select %p109_p9, %s932_s14, %s111_s22  }
  0x35   : > { %p818_p4 = pnand %p817_p2, %p816_p7 }
  0x37   : > { %p819_p5 = pneg %p818_p4 }
  0x39   : > { %p824_p13 = pnand %p822_p11, %p819_p5 }
  0x3b   : > { %827 = shalt.err (!%p824_p13)
}
  0x3c   : > { %s828_s22 = scalar_lea.vmem %s185_s5, 512  ;;  %s835_s21 = scalar_lea.vmem %s185_s5, 1024 }
  0x3d   : > { %p829_p3 = scmp.ne.s32.totalorder %s185_s5, %s828_s22  ;;  %p836_p1 = scmp.lt.s32.totalorder %s185_s5, %s185_s5 }
  0x3e   : > { %p837_p9 = scmp.lt.s32.totalorder %s835_s21, %s828_s22 }
  0x3f   : > { %p831_p12 = pnand %p829_p3, %p817_p2 }
  0x40   : > { %p838_p6 = por %p837_p9, %p836_p1 }
  0x41   : > { %p832_p10 = pneg %p831_p12 }
  0x43   : > { %p839_p0 = pnand %p838_p6, %p832_p10 }
  0x45   : > { %842 = shalt.err (!%p839_p0)
}
  0x46   : > { %s957_s23 = smov 128   ;;  %s958_s28 = smov 8  }
  0x47   : > { %642 = dma.hbm_to_vmem [thread:$0]  (!%p1070_p8), %s1236_s2, 512, %s185_s5, %s171_s7, %s957_s23, %s957_s23, %s958_s28  }
  0x48   : > { %p1249_p7 = scmp.ne.s32.totalorder %s1246_s27, 0 }
  0x49   : > { %p1250_p2 = scmp.eq.s32.totalorder (!%p1249_p7), %s1021_s20, 0 }
  0x4a   : > { %196 = sbr.rel (%p1249_p7) target bundleno = 732 (0x2dc), region = 32 }
  0x4f   : > { %906 = dma.done.wait (%p1250_p2), [#allocation8], 128   ;;  %p1251_p4 = pmov %p1250_p2 }
  0x50   : > { %p1252_p6 = pmov %p1250_p2 }
  0x51   : > { %908 = vsyncadd (%p1251_p4), [#allocation8], 4294967168 }
  0x52   : > { %910 = dma.done.wait (%p1252_p6), [#allocation11], 128   ;;  %p1253_p0 = pmov %p1250_p2 }
  0x53   : > { %s206_s4 = sand.u32 1, %s1021_s20   ;;  %s208_s5 = sand.u32 1, %s940_s16  }
  0x54   : > { %912 = vsyncadd (%p1253_p0), [#allocation11], 4294967168  ;;  %s612_s7 = sshll.u32 %s208_s5, 5  ;;  %s207_s27 = scalar_lea.sflag [#allocation8], %s206_s4 }
  0x55   : > { %s210_s9 = scalar_lea.vmem [#allocation12], %s612_s7  ;;  %p1254_p8 = scmp.ne.s32.totalorder %s1243_s24, 0 }
  0x57   : > { %914 = dma.done.wait (%p1254_p8), %s207_s27, 512  }
  0x58   : > { %916 = vsyncadd (%p1254_p8), %s207_s27, 4294966784  ;;  %vm242_vm0 = vcmask 261120   ;;  %v241_v0 = vld [vmem:[#allocation10] sm:$0xff]  ;;  %v268_v1 = vld [vmem:[%s210_s9 + $0x8] sm:$0xff]  ;;  %vm262_vm1 = vcmask 7168   ;;  %s614_s20 = sshll.u32 %s944_s17, 2 }
  0x59   : > { %v267_v2 = vld [vmem:[%s210_s9] sm:$0xff]  ;;  %v243_v3 = vsel %vm242_vm0, %v241_v0, -inf  ;;  %v275_v4 = vsel %vm242_vm0, %v268_v1, -inf  ;;  %v269_v5 = vld [vmem:[%s210_s9 + $0x10] sm:$0xff]  ;;  %v270_v8 = vld [vmem:[%s210_s9 + $0x18] sm:$0xff]  ;;  %s230_s24 = sand.u32 1, %s928_s13  }
  0x5a   : > { %244 = vmax.xlane.f32.xlu0 %v243_v3  ;;  %276 = vmax.xlane.f32.xlu1 %v275_v4  ;;  %v272_v6 = vsel %vm242_vm0, %v267_v2, -inf  ;;  %v278_v7 = vsel %vm242_vm0, %v269_v5, -inf  ;;  %v281_v9 = vsel %vm242_vm0, %v270_v8, -inf  ;;  %v1137_v12 = vld [vmem:[#allocation7] sm:$0xff]  ;;  %v960_v3 = vmov 0   ;;  %s613_s11 = sshll.u32 %s230_s24, 3 }
  0x5b   : > { %731 = vset.pattern.permute.xlu1 %v960_v3  ;;  %732 = vset.pattern.permute.xlu0 %v960_v3  ;;  %s616_s15 = sshll.u32 %s944_s17, 7  ;;  %s232_s6 = scalar_lea.vmem [#allocation13], %s613_s11 }
  0x5c   : > { %s503_s22 = sshll.u32 %s232_s6, 4  ;;  %s501_s28 = scalar_lea.hbm %s1237_s3, %s616_s15  ;;  %s504_s22 = int_to_ptr.vmem [resolvable:$true] %s503_s22 }
  0x5d   : > { %s490_s30 = scalar_lea.sflag [#allocation9], %s230_s24  ;;  %s843_s8 = scalar_lea.vmem %s504_s22, 128 }
  0x5e   : > { %273 = vmax.xlane.f32.xlu0 %v272_v6  ;;  %279 = vmax.xlane.f32.xlu1 %v278_v7  ;;  %p844_p5 = scmp.ne.s32.totalorder %s504_s22, %s843_s8  ;;  %p1255_p11 = scmp.ne.s32.totalorder %s1244_s25, 0 }
  0x5f   : > { %s961_s4 = smov [#allocation13]  }
  0x60   : > { %p845_p13 = pnand %p844_p5, %p1255_p11  ;;  %s847_s17 = sshll.u32 %s961_s4, 4  ;;  %s848_s17 = int_to_ptr.vmem [resolvable:$false] %s847_s17 }
  0x61   : > { %s849_s5 = scalar_lea.vmem %s848_s17, 256  ;;  %p850_p12 = scmp.lt.s32.totalorder %s504_s22, %s848_s17 }
  0x62   : > { %282 = vmax.xlane.f32.xlu0 %v281_v9  ;;  %p846_p3 = pneg %p845_p13  ;;  %p851_p10 = scmp.lt.s32.totalorder %s849_s5, %s843_s8 }
  0x64   : > { %p852_p1 = por %p851_p10, %p850_p12 }
  0x66   : > { %p853_p9 = pnand %p852_p1, %p846_p3 }
  0xe3   : > { %v245_v10 = vpop.xlane.xlu0 %244  ;;  %v277_v11 = vpop.xlane.xlu1 %276 }
  0xe4   : > { %v246_v13 = vsub.f32 %v241_v0, %v245_v10  ;;  %v285_v14 = vsub.f32 %v268_v1, %v277_v11 }
  0xe6   : > { %v247_v15 = vmul.f32 1.442695, %v246_v13  ;;  %v324_v16 = vmul.f32 %v1137_v12, %v285_v14  ;;  %v290_v17 = vmul.f32 1.442695, %v285_v14 }
  0xe7   : > { %v274_v18 = vpop.xlane.xlu0 %273  ;;  %v280_v19 = vpop.xlane.xlu1 %279 }
  0xe8   : > { %733 = vpow2.f32 %v247_v15  ;;  %v284_v20 = vsub.f32 %v267_v2, %v274_v18  ;;  %v286_v21 = vsub.f32 %v269_v5, %v280_v19  ;;  %v330_v22 = vsel %vm242_vm0, %v324_v16, 0.0 }
  0xe9   : > { %331 = vadd.xlane.f32.xlu0 %v330_v22  ;;  %735 = vpow2.f32 %v290_v17  ;;  %v959_v2 = vmov 0.0   ;;  %v373_v17 = vstv %s614_s20 }
  0xea   : > { %v288_v23 = vmul.f32 1.442695, %v284_v20  ;;  %v292_v24 = vmul.f32 1.442695, %v286_v21  ;;  %v323_v28 = vmul.f32 %v1137_v12, %v284_v20  ;;  %v325_v51 = vmul.f32 %v1137_v12, %v286_v21  ;;  %264 = vst.msk [vmem:[#allocation4] sm:$0xff] %vm262_vm1, %v959_v2  ;;  %265 = vst.msk [vmem:[#allocation5] sm:$0xff] %vm262_vm1, %v959_v2 }
  0xeb   : > { %v283_v25 = vpop.xlane.xlu0 %282  ;;  %266 = vst.msk [vmem:[#allocation6] sm:$0xff] %vm262_vm1, %v959_v2  ;;  %vm377_vm2 = vcmp.lt.s32.totalorder %v373_v17, 4 }
  0xec   : > { %737 = vpow2.f32 %v288_v23  ;;  %v287_v26 = vsub.f32 %v270_v8, %v283_v25  ;;  %v327_v32 = vsel %vm242_vm0, %v323_v28, 0.0  ;;  %v333_v54 = vsel %vm242_vm0, %v325_v51, 0.0 }
  0xed   : > { %739 = vpow2.f32 %v292_v24  ;;  %v374_v23 = vadd.s32 1, %v373_v17  ;;  %v375_v28 = vadd.s32 2, %v373_v17 }
  0xee   : > { %v294_v27 = vmul.f32 1.442695, %v287_v26  ;;  %v326_v61 = vmul.f32 %v1137_v12, %v287_v26 }
  0xef   : > { %vm378_vm3 = vcmp.lt.s32.totalorder %v374_v23, 4  ;;  %vm379_vm4 = vcmp.lt.s32.totalorder %v375_v28, 4 }
  0xf0   : > { %741 = vpow2.f32 %v294_v27  ;;  %v336_v63 = vsel %vm242_vm0, %v326_v61, 0.0 }
  0xf5   : > { %v734_v29 = vpop.eup %733 }
  0xf6   : > { %v249_v30 = vsel %vm242_vm0, %v734_v29, 0.0  ;;  %v736_v31 = vpop.eup %735 }
  0xf7   : > { %250 = vadd.xlane.f32.xlu1 %v249_v30  ;;  %v299_v36 = vsel %vm242_vm0, %v736_v31, 0.0  ;;  %v356_v49 = vmul.f32 %v736_v31, %v285_v14 }
  0xf9   : > { %v738_v33 = vpop.eup %737  ;;  %v362_v50 = vsel %vm242_vm0, %v356_v49, 0.0 }
  0xfa   : > { %v740_v34 = vpop.eup %739  ;;  %v296_v35 = vsel %vm242_vm0, %v738_v33, 0.0  ;;  %v355_v40 = vmul.f32 %v738_v33, %v284_v20 }
  0xfb   : > { %328 = vadd.xlane.f32.xlu1 %v327_v32  ;;  %297 = vadd.xlane.f32.xlu0 %v296_v35  ;;  %v302_v37 = vsel %vm242_vm0, %v740_v34, 0.0  ;;  %v357_v42 = vmul.f32 %v740_v34, %v286_v21 }
  0xfc   : > { %v359_v41 = vsel %vm242_vm0, %v355_v40, 0.0 }
  0xfd   : > { %v742_v38 = vpop.eup %741  ;;  %v365_v43 = vsel %vm242_vm0, %v357_v42, 0.0 }
  0xfe   : > { %v305_v39 = vsel %vm242_vm0, %v742_v38, 0.0  ;;  %v358_v0 = vmul.f32 %v742_v38, %v287_v26 }
  0xff   : > { %300 = vadd.xlane.f32.xlu1 %v299_v36  ;;  %303 = vadd.xlane.f32.xlu0 %v302_v37 }
 0x100   : > { %v368_v1 = vsel %vm242_vm0, %v358_v0, 0.0 }
 0x103   : > { %306 = vadd.xlane.f32.xlu1 %v305_v39 }
 0x107   : > { %360 = vadd.xlane.f32.xlu1 %v359_v41 }
 0x10b   : > { %366 = vadd.xlane.f32.xlu1 %v365_v43 }
 0x172   : > { %v332_v4 = vpop.xlane.xlu0 %331 }
 0x180   : > { %v251_v44 = vpop.xlane.xlu1 %250 }
 0x181   : > { %743 = vrcp.f32 %v251_v44 }
 0x182   : > { %745 = vlog2.f32 %v251_v44 }
 0x184   : > { %v329_v5 = vpop.xlane.xlu1 %328  ;;  %v298_v6 = vpop.xlane.xlu0 %297 }
 0x185   : > { %747 = vlog2.f32 %v298_v6 }
 0x188   : > { %v301_v7 = vpop.xlane.xlu1 %300  ;;  %v304_v8 = vpop.xlane.xlu0 %303 }
 0x189   : > { %749 = vlog2.f32 %v301_v7 }
 0x18a   : > { %751 = vlog2.f32 %v304_v8 }
 0x18b   : > { %753 = vrcp.f32 %v301_v7  ;;  %v413_v7 = vld [vmem:[#allocation4] sm:$0xff] }
 0x18c   : > { %v307_v9 = vpop.xlane.xlu1 %306  ;;  %755 = vrcp.f32 %v298_v6 }
 0x18d   : > { %757 = vlog2.f32 %v307_v9 }
 0x18e   : > { %v744_v45 = vpop.eup %743  ;;  %759 = vrcp.f32 %v304_v8 }
 0x18f   : > { %v255_v46 = vmul.f32 %v744_v45, %v734_v29  ;;  %v746_v10 = vpop.eup %745  ;;  %761 = vrcp.f32 %v307_v9 }
 0x190   : > { %v361_v11 = vpop.xlane.xlu1 %360  ;;  %v254_v12 = vmul.f32 0.6931472, %v746_v10 }
 0x191   : > { %256 = vst.msk [vmem:[#allocation2] sm:$0xff] %vm242_vm0, %v255_v46  ;;  %v257_v47 = vmul.f32 %v255_v46, %v246_v13  ;;  %v376_v46 = vadd.s32 3, %v373_v17 }
 0x192   : > { %v748_v13 = vpop.eup %747 }
 0x193   : > { %v258_v48 = vsel %vm242_vm0, %v257_v47, 0.0  ;;  %v309_v19 = vmul.f32 0.6931472, %v748_v13  ;;  %vm380_vm5 = vcmp.lt.s32.totalorder %v376_v46, 4 }
 0x194   : > { %259 = vadd.xlane.f32.xlu0 %v258_v48 }
 0x195   : > { %v381_v30 = vsub.f32 %v309_v19, %v329_v5 }
 0x196   : > { %v750_v15 = vpop.eup %749 }
 0x197   : > { %v311_v18 = vmul.f32 0.6931472, %v750_v15  ;;  %v752_v22 = vpop.eup %751  ;;  %v385_v42 = vsel %vm377_vm2, %v381_v30, 0.0 }
 0x198   : > { %363 = vadd.xlane.f32.xlu0 %v362_v50  ;;  %v321_v52 = vld [vmem:[#allocation2] sm:$0xff]  ;;  %v754_v24 = vpop.eup %753  ;;  %v313_v27 = vmul.f32 0.6931472, %v752_v22 }
 0x199   : > { %v339_v53 = vmul.f32 %v321_v52, %v284_v20  ;;  %v340_v56 = vmul.f32 %v321_v52, %v285_v14  ;;  %v341_v57 = vmul.f32 %v321_v52, %v286_v21  ;;  %v342_v60 = vmul.f32 %v321_v52, %v287_v26  ;;  %v367_v20 = vpop.xlane.xlu1 %366  ;;  %v756_v25 = vpop.eup %755 }
 0x19a   : > { %v758_v26 = vpop.eup %757  ;;  %v382_v31 = vsub.f32 %v311_v18, %v332_v4  ;;  %v401_v34 = vmul.f32 %v756_v25, %v361_v11 }
 0x19b   : > { %v343_v55 = vsel %vm242_vm0, %v339_v53, 0.0  ;;  %v346_v58 = vsel %vm242_vm0, %v340_v56, 0.0  ;;  %v349_v59 = vsel %vm242_vm0, %v341_v57, 0.0  ;;  %v352_v62 = vsel %vm242_vm0, %v342_v60, 0.0  ;;  %v760_v37 = vpop.eup %759 }
 0x19c   : > { %334 = vadd.xlane.f32.xlu0 %v333_v54  ;;  %344 = vadd.xlane.f32.xlu1 %v343_v55  ;;  %v315_v41 = vmul.f32 0.6931472, %v758_v26  ;;  %v386_v43 = vsel %vm378_vm3, %v382_v31, 0.0  ;;  %v405_v51 = vsub.f32 %v309_v19, %v401_v34  ;;  %v403_v52 = vmul.f32 %v760_v37, %v367_v20  ;;  %v762_v11 = vpop.eup %761 }
 0x19e   : > { %v409_v3 = vsel %vm377_vm2, %v405_v51, 0.0  ;;  %v407_v6 = vsub.f32 %v313_v27, %v403_v52  ;;  %v463_v52 = vlaneseq }
 0x1a0   : > { %347 = vadd.xlane.f32.xlu0 %v346_v58  ;;  %350 = vadd.xlane.f32.xlu1 %v349_v59  ;;  %v414_v59 = vadd.f32 %v386_v43, %v385_v42  ;;  %v411_v20 = vsel %vm379_vm4, %v407_v6, 0.0 }
 0x1a4   : > { %353 = vadd.xlane.f32.xlu0 %v352_v62  ;;  %337 = vadd.xlane.f32.xlu1 %v336_v63 }
 0x1a8   : > { %369 = vadd.xlane.f32.xlu0 %v368_v1 }
 0x21d   : > { %v260_v14 = vpop.xlane.xlu0 %259 }
 0x21e   : > { %v261_v16 = vsub.f32 %v260_v14, %v254_v12  ;;  %v420_v14 = vld [vmem:[#allocation5] sm:$0xff] }
 0x220   : > { %263 = vst.msk [vmem:[#allocation3] sm:$0xff] %vm262_vm1, %v261_v16 }
 0x221   : > { %v364_v21 = vpop.xlane.xlu0 %363 }
 0x222   : > { %v402_v33 = vmul.f32 %v754_v24, %v364_v21  ;;  %v430_v24 = vld [vmem:[#allocation6] sm:$0xff] }
 0x224   : > { %v406_v47 = vsub.f32 %v311_v18, %v402_v33 }
 0x225   : > { %v345_v29 = vpop.xlane.xlu1 %344  ;;  %v335_v32 = vpop.xlane.xlu0 %334 }
 0x226   : > { %v383_v36 = vsub.f32 %v313_v27, %v335_v32  ;;  %v410_v63 = vsel %vm378_vm3, %v406_v47, 0.0 }
 0x227   : > { %v322_v35 = vld [vmem:[#allocation3] sm:$0xff]  ;;  %v431_v12 = vadd.f32 %v410_v63, %v409_v3 }
 0x228   : > { %v389_v38 = vadd.f32 %v322_v35, %v309_v19  ;;  %v391_v39 = vadd.f32 %v322_v35, %v313_v27  ;;  %v390_v40 = vadd.f32 %v322_v35, %v311_v18  ;;  %v387_v53 = vsel %vm379_vm4, %v383_v36, 0.0 }
 0x229   : > { %v351_v44 = vpop.xlane.xlu1 %350  ;;  %v348_v45 = vpop.xlane.xlu0 %347  ;;  %v392_v57 = vadd.f32 %v322_v35, %v315_v41  ;;  %v415_v4 = vadd.f32 %v414_v59, %v387_v53  ;;  %v432_v23 = vadd.f32 %v431_v12, %v411_v20  ;;  %v464_v53 = vand.u32 127, %v463_v52 }
 0x22a   : > { %v393_v48 = vsub.f32 %v389_v38, %v345_v29  ;;  %v395_v49 = vsub.f32 %v391_v39, %v351_v44  ;;  %v394_v50 = vsub.f32 %v390_v40, %v348_v45 }
 0x22b   : > { %vm465_vm6 = vcmp.eq.s32.totalorder %v464_v53, 0  ;;  %vm472_vm7 = vcmp.eq.s32.totalorder %v464_v53, 1  ;;  %vm480_vm8 = vcmp.eq.s32.totalorder %v464_v53, 2 }
 0x22c   : > { %v397_v54 = vsel %vm377_vm2, %v393_v48, 0.0  ;;  %v399_v55 = vsel %vm379_vm4, %v395_v49, 0.0  ;;  %v398_v56 = vsel %vm378_vm3, %v394_v50, 0.0 }
 0x22d   : > { %v421_v58 = vsel %vm262_vm1, %v397_v54, 0.0  ;;  %v422_v60 = vsel %vm262_vm1, %v398_v56, 0.0  ;;  %v338_v61 = vpop.xlane.xlu1 %337  ;;  %v354_v62 = vpop.xlane.xlu0 %353  ;;  %v424_v5 = vsel %vm262_vm1, %v399_v55, 0.0 }
 0x22e   : > { %v423_v0 = vadd.f32 %v422_v60, %v421_v58  ;;  %v384_v1 = vsub.f32 %v315_v41, %v338_v61  ;;  %v396_v2 = vsub.f32 %v392_v57, %v354_v62 }
 0x230   : > { %v388_v8 = vsel %vm380_vm5, %v384_v1, 0.0  ;;  %v425_v9 = vadd.f32 %v424_v5, %v423_v0  ;;  %v400_v10 = vsel %vm380_vm5, %v396_v2, 0.0 }
 0x231   : > { %v416_v13 = vadd.f32 %v415_v4, %v388_v8  ;;  %v426_v15 = vsel %vm262_vm1, %v400_v10, 0.0  ;;  %v370_v16 = vpop.xlane.xlu0 %369 }
 0x232   : > { %v427_v18 = vadd.f32 %v426_v15, %v425_v9  ;;  %v404_v17 = vmul.f32 %v762_v11, %v370_v16 }
 0x233   : > { %v417_v19 = vadd.f32 %v416_v13, %v413_v7 }
 0x234   : > { %v428_v21 = vadd.f32 %v427_v18, %v420_v14  ;;  %v408_v22 = vsub.f32 %v315_v41, %v404_v17 }
 0x235   : > { %419 = vst.msk [vmem:[#allocation4] sm:$0xff] %vm262_vm1, %v417_v19 }
 0x236   : > { %429 = vst.msk [vmem:[#allocation5] sm:$0xff] %vm262_vm1, %v428_v21  ;;  %v412_v25 = vsel %vm380_vm5, %v408_v22, 0.0 }
 0x237   : > { %v433_v26 = vadd.f32 %v432_v23, %v412_v25 }
 0x239   : > { %v434_v27 = vadd.f32 %v433_v26, %v430_v24 }
 0x23b   : > { %435 = vst.msk [vmem:[#allocation6] sm:$0xff] %vm262_vm1, %v434_v27 }
 0x23c   : > { %v439_v29 = vld [vmem:[#allocation4] sm:$0xff] }
 0x23d   : > { %v440_v30 = vsel %vm262_vm1, %v439_v29, 0.0  ;;  %v447_v31 = vld [vmem:[#allocation5] sm:$0xff] }
 0x23e   : > { %v441_v28 = vrot.slane %v440_v30, 4  ;;  %v448_v32 = vsel %vm262_vm1, %v447_v31, 0.0 }
 0x23f   : > { %v449_v33 = vrot.slane %v448_v32, 4 }
 0x240   : > { %v442_v34 = vadd.f32 %v441_v28, %v440_v30 }
 0x241   : > { %v450_v35 = vadd.f32 %v449_v33, %v448_v32 }
 0x242   : > { %v443_v36 = vrot.slane %v442_v34, 2  ;;  %v455_v37 = vld [vmem:[#allocation6] sm:$0xff] }
 0x243   : > { %v451_v38 = vrot.slane %v450_v35, 2  ;;  %v456_v39 = vsel %vm262_vm1, %v455_v37, 0.0 }
 0x244   : > { %v444_v40 = vadd.f32 %v443_v36, %v442_v34  ;;  %v457_v41 = vrot.slane %v456_v39, 4 }
 0x245   : > { %v452_v42 = vadd.f32 %v451_v38, %v450_v35 }
 0x246   : > { %v445_v43 = vrot.slane %v444_v40, 1  ;;  %v458_v44 = vadd.f32 %v457_v41, %v456_v39 }
 0x247   : > { %v453_v45 = vrot.slane %v452_v42, 1 }
 0x248   : > { %v446_v46 = vadd.f32 %v445_v43, %v444_v40  ;;  %v459_v47 = vrot.slane %v458_v44, 2 }
 0x249   : > { %v454_v48 = vadd.f32 %v453_v45, %v452_v42 }
 0x24a   : > { %468 = vperm.xlu1 %731, %v446_v46   ;;  %v460_v49 = vadd.f32 %v459_v47, %v458_v44 }
 0x24b   : > { %475 = vperm.xlu0 %732, %v454_v48  }
 0x24c   : > { %v461_v50 = vrot.slane %v460_v49, 1 }
 0x24e   : > { %v462_v51 = vadd.f32 %v461_v50, %v460_v49 }
 0x250   : > { %483 = vperm.xlu1 %731, %v462_v51  }
 0x2c5   : > { %v469_v54 = vpop.permute.xlu1 %468 }
 0x2c6   : > { %v476_v55 = vpop.permute.xlu0 %475  ;;  %v471_v56 = vsel %vm465_vm6, %v469_v54, 0.0 }
 0x2c7   : > { %v478_v57 = vsel %vm472_vm7, %v476_v55, 0.0 }
 0x2c8   : > { %v479_v58 = vadd.f32 %v478_v57, %v471_v56 }
 0x2cb   : > { %v484_v59 = vpop.permute.xlu1 %483 }
 0x2cc   : > { %v486_v60 = vsel %vm480_vm8, %v484_v59, 0.0 }
 0x2cd   : > { %v487_v61 = vadd.f32 %v486_v60, %v479_v58 }
 0x2cf   : > { %488 = vst [vmem:[%s232_s6] sm:$0xff] %v487_v61 }
 0x2d0   : > { %856 = shalt.err (!%p853_p9)
}
 0x2d1   : > { %s857_s7 = scalar_lea.hbm %s501_s28, 128  ;;  %s861_s20 = scalar_lea.hbm %s1237_s3, 256 }
 0x2d2   : > { %p858_p7 = scmp.ne.s32.totalorder %s501_s28, %s857_s7  ;;  %p862_p6 = scmp.lt.s32.totalorder %s501_s28, %s1237_s3 }
 0x2d3   : > { %p863_p0 = scmp.lt.s32.totalorder %s861_s20, %s857_s7 }
 0x2d4   : > { %p859_p2 = pnand %p858_p7, %p1255_p11 }
 0x2d5   : > { %p864_p8 = por %p863_p0, %p862_p6 }
 0x2d6   : > { %p860_p4 = pneg %p859_p2 }
 0x2d8   : > { %p865_p5 = pnand %p864_p8, %p860_p4 }
 0x2da   : > { %868 = shalt.err (!%p865_p5)
}
 0x2db   : > { %630 = dma.vmem_to_hbm [thread:$0]  (%p1255_p11), %s504_s22, 128, %s501_s28, %s490_s30  }
 0x2dc PF: > { %s515_s15 = sand.u32 1, %s924_s12   ;;  %p1256_p13 = scmp.ne.s32.totalorder %s1245_s26, 0 }
 0x2dd   : > { %p1257_p3 = scmp.ge.s32.totalorder %s952_s19, 2  ;;  %s516_s6 = scalar_lea.sflag [#allocation9], %s515_s15 }
 0x2df   : > { %p644_p12 = pnand %p1257_p3, %p1256_p13 }
 0x2e1   : > { %p645_p10 = pneg %p644_p12 }
 0x2e3   : > { %918 = dma.done.wait (%p645_p10), %s516_s6, 128  }
 0x2e4   : > { %920 = vsyncadd (%p645_p10), %s516_s6, 4294967168  ;;  %s18_s19 = sadd.s32 1, %s952_s19   ;;  %s1258_s12 = smov %s928_s13 }
 0x2e5   : > { %p15_p1 = scmp.ge.s32.totalorder %s18_s19, 4   ;;  %s1259_s13 = smov %s932_s14 }
 0x2e6   : > { %s1260_s14 = smov %s1101_s29  ;;  %s1261_s15 = smov %s940_s16 }
 0x2e7   : > { %s1224_s16 = smov 0   ;;  %s1262_s17 = smov %s948_s18 }
 0x2e8   : > { %s1263_s18 = smov %s1265_s10  ;;  %17 = sbr.rel (!%p15_p1) target bundleno = 7 (0x7), region = 92 }
 0x2ed   :  { %521 = vsyncpa [#allocation8], 1 }
 0x2ee   :  { %523 = vsyncpa [#allocation8 + $0x1], 1 }
 0x2ef   :  { %524 = vsyncpa [#allocation11], 1 }
 0x2f0   :  { %525 = vsyncpa [#allocation9], 1 }
 0x2f1   :  { %527 = vsyncpa [#allocation9 + $0x1], 1 }

</bundles_post_ra>
